<compile_context>
chip_gen: v7x
topology: tpu7x:2x2x1
jax: 0.10.0
libtpu: 0.0.40
codegen_flags: <defaults>
</compile_context>

<pallas_src>
import functools

import jax
import jax.numpy as jnp
from jax import lax
from jax.experimental import pallas as pl
from jax.experimental.pallas import tpu as pltpu


def sample_layer_kernel(mu_t_ref, mu_s_ref, sigma_ref, eps_ref, out_ref, *, radius):
    R = jnp.float32(radius)
    inv_R = jnp.float32(1.0 / radius)

    # Feature-major tiles: features on sublanes, batch on the 128-wide lane axis.
    mu_t = mu_t_ref[...].astype(jnp.float32)     # (1, TB)  hyperboloid time coordinate
    mu_s = mu_s_ref[...].astype(jnp.float32)     # (D, TB)  spatial coordinates
    sigma = sigma_ref[...].astype(jnp.float32)   # (D, TB)
    eps = eps_ref[...].astype(jnp.float32)       # (D, TB)

    # --- base reparameterized sample in the tangent space at mu0 = (R, 0, ..., 0)
    v = eps * sigma                              # spatial part; time component is 0

    # --- parallel transport mu0 -> mu
    #   pt(v) = v + <mu, v>_L / (R^2 - <mu0, mu>_L) * (mu0 + mu)
    #   with v_time = 0:  <mu, v>_L = sum(mu_s * v);   <mu0, mu>_L = -R * mu_t
    inner_mu_v = jnp.sum(mu_s * v, axis=0, keepdims=True)          # (1, TB) sublane reduce
    inv_denom = pl.reciprocal(R * R + R * mu_t, approx=True)       # EUP, ~2^-12 rel err
    coef = inner_mu_v * inv_denom                                  # (1, TB)
    pt_t = coef * (R + mu_t)                                       # mu0_t + mu_t = R + mu_t
    pt_s = v + coef * mu_s                                         # mu0 spatial part is 0

    # --- exponential map at mu (radius-R hyperboloid)
    #   theta = ||u||_L / R,  exp_mu(u) = cosh(theta) mu + R sinh(theta) u / ||u||_L
    # NOTE: Lorentz norm computed by cancellation in f32; clamp guards tiny/negative values.
    u_norm_sq = jnp.sum(pt_s * pt_s, axis=0, keepdims=True) - pt_t * pt_t
    u_norm_sq = jnp.maximum(u_norm_sq, jnp.float32(1e-12))
    inv_norm = lax.rsqrt(u_norm_sq)                                # 1/||u||_L
    u_norm = u_norm_sq * inv_norm
    theta = jnp.minimum(u_norm * inv_R, jnp.float32(80.0))         # f32 exp overflow guard

    # cosh/sinh from a single exp pair; exp(-theta) (not an approx reciprocal) so the
    # small-theta cancellation in sinh stays at f32-rounding level.  Both hit the EUP slot.
    e = jnp.exp(theta)
    ei = jnp.exp(-theta)
    ch = jnp.float32(0.5) * (e + ei)
    sh = jnp.float32(0.5) * (e - ei)
    scale = R * sh * inv_norm

    z_t = ch * mu_t + scale * pt_t               # (1, TB)
    z_s = ch * mu_s + scale * pt_s               # (D, TB)

    # --- lorentz_to_poincare(z, R) = R * z_spatial / (R + z_time)
    out_ref[...] = (R * z_s * pl.reciprocal(R + z_t, approx=True)).astype(out_ref.dtype)


def _choose_tb(B):
    """Largest lane tile that divides B and is a multiple of 128, preferring >= 2 grid
    steps (v7x has 2 TensorCores).  Falls back to a single full-width block when B is
    not 128-aligned (block == full dim satisfies the (8,128) rule)."""
    if B < 256 or B % 128 != 0:
        return B                                  # single full-width block
    tb = min((B // 2) // 128 * 128, 4096)         # >=2 parallel steps, capped tile
    while tb >= 128 and B % tb != 0:
        tb -= 128
    return tb if tb >= 128 else B


def sample_layer(mu, sigma, eps, radius):
    B, Dp1 = mu.shape
    D = Dp1 - 1
    assert sigma.shape == (B, D) and eps.shape == (B, D)

    # Split mu outside the kernel (cheap XLA slice, fuses with the transpose; avoids an
    # in-kernel sublane-offset slice of an odd-height (D+1) tile) and present
    # feature-major (D, B) operands so batch maps to the 128-wide lane axis.
    mu_t = jnp.transpose(mu[:, 0:1])              # (1, B)
    mu_s = jnp.transpose(mu[:, 1:])               # (D, B)
    sigma_fm = jnp.transpose(sigma)               # (D, B)
    eps_fm = jnp.transpose(eps)                   # (D, B)

    tb = _choose_tb(B)
    grid = (B // tb,)
    kernel = functools.partial(sample_layer_kernel, radius=float(radius))

    out_fm = pl.pallas_call(
        kernel,
        out_shape=jax.ShapeDtypeStruct((D, B), mu.dtype),
        grid_spec=pltpu.PrefetchScalarGridSpec(
            num_scalar_prefetch=0,
            grid=grid,
            in_specs=[
                pl.BlockSpec((1, tb), lambda i: (0, i)),
                pl.BlockSpec((D, tb), lambda i: (0, i)),
                pl.BlockSpec((D, tb), lambda i: (0, i)),
                pl.BlockSpec((D, tb), lambda i: (0, i)),
            ],
            out_specs=pl.BlockSpec((D, tb), lambda i: (0, i)),
        ),
        compiler_params=pltpu.CompilerParams(dimension_semantics=("parallel",)),
    )(mu_t, mu_s, sigma_fm, eps_fm)

    return jnp.transpose(out_fm)                  # back to (B, D), matching the module


def sample_layer_ref(mu, sigma, eps, radius):
    """Pure-JAX reference of the same math (sanity check)."""
    R = jnp.float32(radius)
    mu = mu.astype(jnp.float32)
    v = eps.astype(jnp.float32) * sigma.astype(jnp.float32)
    mu_t, mu_s = mu[:, 0:1], mu[:, 1:]
    inner = jnp.sum(mu_s * v, axis=-1, keepdims=True)
    coef = inner / (R * R + R * mu_t)
    pt_t = coef * (R + mu_t)
    pt_s = v + coef * mu_s
    u_norm_sq = jnp.maximum(
        jnp.sum(pt_s * pt_s, axis=-1, keepdims=True) - pt_t * pt_t, 1e-12)
    u_norm = jnp.sqrt(u_norm_sq)
    theta = jnp.minimum(u_norm / R, 80.0)
    scale = R * jnp.sinh(theta) / u_norm
    z_t = jnp.cosh(theta) * mu_t + scale * pt_t
    z_s = jnp.cosh(theta) * mu_s + scale * pt_s
    return R * z_s / (R + z_t)


if __name__ == "__main__":
    key = jax.random.PRNGKey(0)
    # Small VAE-style latent.  B is a multiple of 256 so the kernel runs with two
    # 256-lane "parallel" grid steps (exercises v7x's 2 TensorCores; harmless on v5e/v6e).
    B, D = 512, 16
    radius = 1.0

    k_mu, k_sig, k_eps = jax.random.split(key, 3)
    # Deterministic distribution parameters: a valid point on the hyperboloid + positive scales.
    mu_space = 0.5 * jax.random.normal(k_mu, (B, D), dtype=jnp.float32)
    mu_time = jnp.sqrt(radius * radius
                       + jnp.sum(mu_space * mu_space, axis=-1, keepdims=True))
    mu = jnp.concatenate([mu_time, mu_space], axis=-1)            # (B, D+1), <mu,mu>_L = -R^2
    sigma = 0.1 + 0.2 * jax.nn.softplus(jax.random.normal(k_sig, (B, D), dtype=jnp.float32))
    eps = jax.random.normal(k_eps, (B, D), dtype=jnp.float32)     # base-normal sample

    out = jax.block_until_ready(sample_layer(mu, sigma, eps, radius))
    ref = sample_layer_ref(mu, sigma, eps, radius)

    assert out.shape == (B, D)
    assert bool(jnp.all(jnp.isfinite(out)))
    # Tolerance covers the ~2^-12 relative error of the EUP approx reciprocals/rsqrt.
    max_err = float(jnp.max(jnp.abs(out.astype(jnp.float32) - ref)))
    assert bool(jnp.allclose(out, ref, atol=2e-3, rtol=2e-3)), max_err

    print("KERNEL_OK")
</pallas_src>

<mosaic_0001>
module attributes {stable_mosaic.version = 11 : i64} {
  func.func @sample_layer_kernel(%arg0: i32, %arg1: memref<1x256xf32, #tpu.memory_space<vmem>>, %arg2: memref<16x256xf32, #tpu.memory_space<vmem>>, %arg3: memref<16x256xf32, #tpu.memory_space<vmem>>, %arg4: memref<16x256xf32, #tpu.memory_space<vmem>>, %arg5: memref<16x256xf32, #tpu.memory_space<vmem>>) attributes {dimension_semantics = [#tpu.dimension_semantics<parallel>], iteration_bounds = array<i64: 2>, scalar_prefetch = 0 : i64, scratch_operands = 0 : i64, tpu.core_type = #tpu.core_type<tc>, window_params = [{transform_indices = @transform_0, window_bounds = array<i64: 1, 256>}, {transform_indices = @transform_1, window_bounds = array<i64: 16, 256>}, {transform_indices = @transform_2, window_bounds = array<i64: 16, 256>}, {transform_indices = @transform_3, window_bounds = array<i64: 16, 256>}, {transform_indices = @transform_4, window_bounds = array<i64: 16, 256>}]} {
    %c0 = arith.constant 0 : index
    %c0_0 = arith.constant 0 : index
    %0 = vector.load %arg1[%c0, %c0_0] : memref<1x256xf32, #tpu.memory_space<vmem>>, vector<1x256xf32>
    %c0_1 = arith.constant 0 : index
    %c0_2 = arith.constant 0 : index
    %1 = vector.load %arg2[%c0_1, %c0_2] : memref<16x256xf32, #tpu.memory_space<vmem>>, vector<16x256xf32>
    %c0_3 = arith.constant 0 : index
    %c0_4 = arith.constant 0 : index
    %2 = vector.load %arg3[%c0_3, %c0_4] : memref<16x256xf32, #tpu.memory_space<vmem>>, vector<16x256xf32>
    %c0_5 = arith.constant 0 : index
    %c0_6 = arith.constant 0 : index
    %3 = vector.load %arg4[%c0_5, %c0_6] : memref<16x256xf32, #tpu.memory_space<vmem>>, vector<16x256xf32>
    %4 = arith.mulf %3, %2 : vector<16x256xf32>
    %5 = arith.mulf %1, %4 : vector<16x256xf32>
    %cst = arith.constant dense<0.000000e+00> : vector<256xf32>
    %6 = vector.multi_reduction <add>, %5, %cst [0] : vector<16x256xf32> to vector<256xf32>
    %7 = vector.shape_cast %6 : vector<256xf32> to vector<1x256xf32>
    %cst_7 = arith.constant 1.000000e+00 : f32
    %cst_8 = arith.constant 1.000000e+00 : f32
    %8 = arith.mulf %cst_7, %cst_8 : f32
    %cst_9 = arith.constant 1.000000e+00 : f32
    %9 = vector.broadcast %cst_9 : f32 to vector<1x256xf32>
    %10 = arith.mulf %9, %0 : vector<1x256xf32>
    %11 = vector.broadcast %8 : f32 to vector<1x256xf32>
    %12 = arith.addf %11, %10 : vector<1x256xf32>
    %13 = tpu.reciprocal %12 {approx = true} : vector<1x256xf32> -> vector<1x256xf32>
    %14 = arith.mulf %7, %13 : vector<1x256xf32>
    %cst_10 = arith.constant 1.000000e+00 : f32
    %15 = vector.broadcast %cst_10 : f32 to vector<1x256xf32>
    %16 = arith.addf %15, %0 : vector<1x256xf32>
    %17 = arith.mulf %14, %16 : vector<1x256xf32>
    %18 = vector.broadcast %14 : vector<1x256xf32> to vector<16x256xf32>
    %19 = arith.mulf %18, %1 : vector<16x256xf32>
    %20 = arith.addf %4, %19 : vector<16x256xf32>
    %21 = arith.mulf %20, %20 : vector<16x256xf32>
    %cst_11 = arith.constant dense<0.000000e+00> : vector<256xf32>
    %22 = vector.multi_reduction <add>, %21, %cst_11 [0] : vector<16x256xf32> to vector<256xf32>
    %23 = vector.shape_cast %22 : vector<256xf32> to vector<1x256xf32>
    %24 = arith.mulf %17, %17 : vector<1x256xf32>
    %25 = arith.subf %23, %24 : vector<1x256xf32>
    %cst_12 = arith.constant 9.99999996E-13 : f32
    %26 = vector.broadcast %cst_12 : f32 to vector<1x256xf32>
    %27 = arith.maximumf %25, %26 : vector<1x256xf32>
    %28 = math.rsqrt %27 : vector<1x256xf32>
    %29 = arith.mulf %27, %28 : vector<1x256xf32>
    %cst_13 = arith.constant 1.000000e+00 : f32
    %30 = vector.broadcast %cst_13 : f32 to vector<1x256xf32>
    %31 = arith.mulf %29, %30 : vector<1x256xf32>
    %cst_14 = arith.constant 8.000000e+01 : f32
    %32 = vector.broadcast %cst_14 : f32 to vector<1x256xf32>
    %33 = arith.minimumf %31, %32 : vector<1x256xf32>
    %34 = math.exp %33 : vector<1x256xf32>
    %cst_15 = arith.constant 0.000000e+00 : f32
    %35 = vector.broadcast %cst_15 : f32 to vector<1x256xf32>
    %36 = arith.subf %35, %33 : vector<1x256xf32>
    %37 = math.exp %36 : vector<1x256xf32>
    %38 = arith.addf %34, %37 : vector<1x256xf32>
    %cst_16 = arith.constant 5.000000e-01 : f32
    %39 = vector.broadcast %cst_16 : f32 to vector<1x256xf32>
    %40 = arith.mulf %39, %38 : vector<1x256xf32>
    %41 = arith.subf %34, %37 : vector<1x256xf32>
    %cst_17 = arith.constant 5.000000e-01 : f32
    %42 = vector.broadcast %cst_17 : f32 to vector<1x256xf32>
    %43 = arith.mulf %42, %41 : vector<1x256xf32>
    %cst_18 = arith.constant 1.000000e+00 : f32
    %44 = vector.broadcast %cst_18 : f32 to vector<1x256xf32>
    %45 = arith.mulf %44, %43 : vector<1x256xf32>
    %46 = arith.mulf %45, %28 : vector<1x256xf32>
    %47 = arith.mulf %40, %0 : vector<1x256xf32>
    %48 = arith.mulf %46, %17 : vector<1x256xf32>
    %49 = arith.addf %47, %48 : vector<1x256xf32>
    %50 = vector.broadcast %40 : vector<1x256xf32> to vector<16x256xf32>
    %51 = arith.mulf %50, %1 : vector<16x256xf32>
    %52 = vector.broadcast %46 : vector<1x256xf32> to vector<16x256xf32>
    %53 = arith.mulf %52, %20 : vector<16x256xf32>
    %54 = arith.addf %51, %53 : vector<16x256xf32>
    %cst_19 = arith.constant 1.000000e+00 : f32
    %55 = vector.broadcast %cst_19 : f32 to vector<16x256xf32>
    %56 = arith.mulf %55, %54 : vector<16x256xf32>
    %cst_20 = arith.constant 1.000000e+00 : f32
    %57 = vector.broadcast %cst_20 : f32 to vector<1x256xf32>
    %58 = arith.addf %57, %49 : vector<1x256xf32>
    %59 = tpu.reciprocal %58 {approx = true} : vector<1x256xf32> -> vector<1x256xf32>
    %60 = vector.broadcast %59 : vector<1x256xf32> to vector<16x256xf32>
    %61 = arith.mulf %56, %60 : vector<16x256xf32>
    %c0_21 = arith.constant 0 : index
    %c0_22 = arith.constant 0 : index
    %62 = vector.load %arg5[%c0_21, %c0_22] : memref<16x256xf32, #tpu.memory_space<vmem>>, vector<16x256xf32>
    tpu.vector_store %arg5[%c0_21, %c0_22], %61 {strides = array<i32>} : memref<16x256xf32, #tpu.memory_space<vmem>>, vector<16x256xf32>,
    return
  }
  func.func @transform_0(%arg0: i32) -> (i32, i32) {
    %c0_i32 = arith.constant 0 : i32
    %c0_i32_0 = arith.constant 0 : i32
    return %c0_i32, %arg0 : i32, i32
  }
  func.func @transform_1(%arg0: i32) -> (i32, i32) {
    %c0_i32 = arith.constant 0 : i32
    %c0_i32_0 = arith.constant 0 : i32
    return %c0_i32, %arg0 : i32, i32
  }
  func.func @transform_2(%arg0: i32) -> (i32, i32) {
    %c0_i32 = arith.constant 0 : i32
    %c0_i32_0 = arith.constant 0 : i32
    return %c0_i32, %arg0 : i32, i32
  }
  func.func @transform_3(%arg0: i32) -> (i32, i32) {
    %c0_i32 = arith.constant 0 : i32
    %c0_i32_0 = arith.constant 0 : i32
    return %c0_i32, %arg0 : i32, i32
  }
  func.func @transform_4(%arg0: i32) -> (i32, i32) {
    %c0_i32 = arith.constant 0 : i32
    %c0_i32_0 = arith.constant 0 : i32
    return %c0_i32, %arg0 : i32, i32
  }
}

</mosaic_0001>

<bundles_post_ra>
// kernel: tpu_custom_call.1
= control target key start
LH: loop header
LB: loop body
LE: loop exit
PB: predicated region body
PF: predicated region fallthrough
CT: control target
= control target key end

     0   :  { %s1391_s0 = inlined_call_operand.hbm [shape: f32[1,512], index: 0, kind: input, shape index: {}]   ;;  %s1392_s1 = inlined_call_operand.hbm [shape: f32[16,512], index: 1, kind: input, shape index: {}]   ;;  %s1393_s2 = inlined_call_operand.hbm [shape: f32[16,512], index: 2, kind: input, shape index: {}]   ;;  %s1394_s3 = inlined_call_operand.hbm [shape: f32[16,512], index: 3, kind: input, shape index: {}]   ;;  %s1395_s4 = inlined_call_operand.hbm [shape: f32[16,512], index: 4, kind: output, shape index: {}]  }
   0x1   :  { %1407 = sst [smem:[#allocation17_spill]] %s1392_s1 }
   0x2   :  { %9 = vsyncpa [#allocation3], 0 }
   0x3   :  { %11 = vsyncpa [#allocation3 + $0x1], 0 }
   0x4   :  { %12 = vsyncpa [#allocation6], 0 }
   0x5   :  { %14 = vsyncpa [#allocation6 + $0x1], 0 }
   0x6   :  { %15 = vsyncpa [#allocation9], 0 }
   0x7   :  { %17 = vsyncpa [#allocation9 + $0x1], 0 }
   0x8   :  { %18 = vsyncpa [#allocation4], 0 }
   0x9   :  { %20 = vsyncpa [#allocation4 + $0x1], 0  ;;  %s1031_s15 = smov 0   ;;  %s1033_s16 = smov 0  }
   0xa   :  { %s1035_s17 = smov 0   ;;  %s1037_s18 = smov 0  }
   0xb LB: > { %1408 = sst [smem:[#allocation15_spill]] %s989_s17  ;;  %s1052_s19 = sadd.s32 4294967295, %s993_s18   ;;  %s993_s18 = sphi %s1037_s18, %s1430_s18   ;;  %s989_s17 = sphi %s1035_s17, %s1427_s17   ;;  %s985_s16 = sphi %s1033_s16, %s1429_s16   ;;  %s981_s15 = sphi %s1031_s15, %s1428_s15  }
   0xc   : > { %s683_s20 = sadd.s32 4294967294, %s993_s18   ;;  %s1056_s21 = sadd.s32 1, %s993_s18  }
   0xd   : > { %s33_s22 = sadd.s32 1, %s989_s17  ;;  %s30_s23 = ssub.s32 %s993_s18, %s1056_s21 }
   0xe   : > { %p40_p0 = scmp.ne.s32.totalorder %s989_s17, %s985_s16  ;;  %p31_p1 = scmp.eq.s32.totalorder %s30_s23, 0 }
   0xf   : > { %p41_p2 = scmp.eq.s32.totalorder %s993_s18, 0  ;;  %p46_p3 = scmp.ne.s32.totalorder %s985_s16, %s981_s15 }
  0x10   : > { %p47_p4 = scmp.eq.s32.totalorder %s1052_s19, 0  ;;  %p148_p7 = scmp.eq.s32.totalorder %s1052_s19, 1 }
  0x11   : > { %s1068_s24 = scalar_select %p31_p1, %s989_s17, %s33_s22  }
  0x12   : > { %p42_p5 = por %p41_p2, %p40_p0  ;;  %p1070_p6 = por %p47_p4, %p46_p3 }
  0x13   : > { %1409 = sst [smem:[#allocation16_spill]] %s1068_s24  ;;  %p154_p8 = scmp.eq.s32.totalorder %s683_s20, 1 }
  0x14   : > { %s1410_s25 = scalar_select %p1070_p6, 1, 0 }
  0x15   : > { %p741_p10 = scmp.lt.s32.totalorder %s993_s18, 2  ;;  %p1077_p11 = por %p148_p7, %p40_p0 }
  0x16   : > { %p1081_p12 = por %p154_p8, %p46_p3  ;;  %s1086_s28 = sand.u32 1, %s989_s17  }
  0x17   : > { %s1411_s26 = scalar_select %p1077_p11, 1, 0 }
  0x18   : > { %s1412_s27 = scalar_select %p1081_p12, 1, 0 }
  0x19   : > { %p1088_p13 = pnand %p741_p10, %p42_p5  ;;  %s193_s30 = sand.u32 1, %s993_s18  }
  0x1a   : > { %s1094_s5 = sshll.u32 %s1086_s28, 5  ;;  %s1097_s6 = sshll.u32 %s993_s18, 8 }
  0x1b   : > { %s1413_s29 = scalar_select %p1088_p13, 1, 0 }
  0x1c   : > { %s1414_s1 = sld [smem:[#allocation17_spill]]  ;;  %s197_s10 = scalar_lea.vmem [#allocation5], %s1094_s5 }
  0x1d   : > { %s204_s11 = sshll.u32 %s197_s10, 4  ;;  %s1108_s12 = scalar_lea.sflag [#allocation6], %s193_s30  ;;  %s1106_s11 = int_to_ptr.vmem [resolvable:$true] %s204_s11 }
  0x1e   : > { %p1114_p1 = pneg %p1088_p13 }
  0x22   : > { %s1103_s9 = scalar_lea.hbm %s1414_s1, %s1097_s6  ;;  %s804_s23 = scalar_lea.hbm %s1414_s1, 1024 }
  0x23   : > { %s799_s13 = scalar_lea.hbm %s1103_s9, 512  ;;  %p805_p4 = scmp.lt.u32.totalorder %s1103_s9, %s1414_s1 }
  0x24   : > { %p800_p0 = scmp.ne.s32.totalorder %s1103_s9, %s799_s13  ;;  %p806_p5 = scmp.lt.u32.totalorder %s804_s23, %s799_s13 }
  0x25   : > { %p808_p8 = scmp.lt.u32.totalorder %s799_s13, %s1103_s9 }
  0x26   : > { %p802_p2 = pnand %p1114_p1, %p800_p0  ;;  %p807_p7 = por %p806_p5, %p805_p4 }
  0x28   : > { %p803_p3 = pneg %p802_p2  ;;  %p809_p10 = por %p808_p8, %p807_p7 }
  0x2a   : > { %p810_p9 = pnand %p809_p10, %p803_p3 }
  0x2c   : > { %813 = shalt.err (!%p810_p9)
}
  0x2d   : > { %s814_s30 = scalar_lea.vmem %s1106_s11, 512  ;;  %s995_s10 = smov [#allocation5]  }
  0x2e   : > { %p815_p0 = scmp.ne.s32.totalorder %s1106_s11, %s814_s30  ;;  %s819_s20 = sshll.u32 %s995_s10, 4  ;;  %s820_s20 = int_to_ptr.vmem [resolvable:$false] %s819_s20 }
  0x2f   : > { %s821_s22 = scalar_lea.vmem %s820_s20, 1024  ;;  %p822_p11 = scmp.lt.s32.totalorder %s1106_s11, %s820_s20 }
  0x30   : > { %p817_p2 = pnand %p815_p0, %p1114_p1  ;;  %p823_p6 = scmp.lt.s32.totalorder %s821_s22, %s814_s30 }
  0x32   : > { %p818_p12 = pneg %p817_p2  ;;  %p824_p4 = por %p823_p6, %p822_p11 }
  0x34   : > { %p825_p5 = pnand %p824_p4, %p818_p12 }
  0x36   : > { %828 = shalt.err (!%p825_p5)
}
  0x37   : > { %s1399_s13 = smov 512   ;;  %s1401_s23 = smov 256  }
  0x38   : > { %s1403_s7 = smov 16   ;;  %p698_p6 = scmp.ge.s32.totalorder %s993_s18, 1 }
  0x39   : > { %730 = dma.hbm_to_vmem [thread:$0]  (!%p1088_p13), %s1103_s9, 512, %s1106_s11, %s1108_s12, %s1399_s13, %s1401_s23, %s1403_s7  }
  0x3a   : > { %p254_p9 = scmp.lt.s32.totalorder %s993_s18, 3  ;;  %s686_s8 = sshll.u32 %s1086_s28, 1 }
  0x3b   : > { %s709_s10 = sshll.u32 %s993_s18, 5  ;;  %s178_s20 = scalar_lea.vmem [#allocation2], %s686_s8 }
  0x3c   : > { %p1144_p11 = pnand %p698_p6, %p254_p9  ;;  %s186_s22 = sshll.u32 %s178_s20, 4  ;;  %s187_s22 = int_to_ptr.vmem [resolvable:$true] %s186_s22 }
  0x3d   : > { %s1152_s17 = scalar_lea.hbm %s1391_s0, %s709_s10  ;;  %s175_s9 = scalar_lea.sflag [#allocation3], %s1086_s28 }
  0x3e   : > { %s1416_s30 = scalar_select %p1144_p11, 1, 0 }
  0x3f   : > { %s829_s11 = scalar_lea.hbm %s1152_s17, 32  ;;  %s834_s8 = scalar_lea.hbm %s1391_s0, 64 }
  0x40   : > { %p830_p12 = scmp.ne.s32.totalorder %s1152_s17, %s829_s11  ;;  %p835_p8 = scmp.lt.u32.totalorder %s1152_s17, %s1391_s0 }
  0x41   : > { %p836_p10 = scmp.lt.u32.totalorder %s834_s8, %s829_s11  ;;  %p838_p2 = scmp.lt.u32.totalorder %s829_s11, %s1152_s17 }
  0x42   : > { %p832_p3 = pnand %p830_p12, %p1114_p1 }
  0x43   : > { %p837_p0 = por %p836_p10, %p835_p8 }
  0x44   : > { %p833_p7 = pneg %p832_p3 }
  0x45   : > { %p839_p4 = por %p838_p2, %p837_p0 }
  0x47   : > { %p840_p5 = pnand %p839_p4, %p833_p7 }
  0x49   : > { %843 = shalt.err (!%p840_p5)
}
  0x4a   : > { %s844_s1 = scalar_lea.vmem %s187_s22, 32  ;;  %s999_s24 = smov [#allocation2]  }
  0x4b   : > { %p845_p6 = scmp.ne.s32.totalorder %s187_s22, %s844_s1  ;;  %s849_s10 = sshll.u32 %s999_s24, 4  ;;  %s850_s10 = int_to_ptr.vmem [resolvable:$false] %s849_s10 }
  0x4c   : > { %s851_s13 = scalar_lea.vmem %s850_s10, 64  ;;  %p852_p3 = scmp.lt.s32.totalorder %s187_s22, %s850_s10 }
  0x4d   : > { %p847_p9 = pnand %p845_p6, %p1114_p1  ;;  %p853_p11 = scmp.lt.s32.totalorder %s851_s13, %s844_s1 }
  0x4f   : > { %p848_p12 = pneg %p847_p9  ;;  %p854_p13 = por %p853_p11, %p852_p3 }
  0x51   : > { %p855_p8 = pnand %p854_p13, %p848_p12 }
  0x53   : > { %858 = shalt.err (!%p855_p8)
}
  0x54   : > { %p1417_p10 = scmp.ne.s32.totalorder %s1413_s29, 0  ;;  %s1176_s11 = scalar_lea.hbm %s1393_s2, %s1097_s6 }
  0x55   : > { %s218_s8 = scalar_lea.vmem [#allocation7], %s1094_s5  ;;  %s859_s1 = scalar_lea.hbm %s1176_s11, 512 }
  0x56   : > { %727 = dma.hbm_to_vmem [thread:$0]  (!%p1417_p10), %s1152_s17, 32, %s187_s22, %s175_s9  }
  0x57   : > { %s225_s20 = sshll.u32 %s218_s8, 4  ;;  %p860_p13 = scmp.ne.s32.totalorder %s1176_s11, %s859_s1  ;;  %s1179_s20 = int_to_ptr.vmem [resolvable:$true] %s225_s20 }
  0x58   : > { %s864_s22 = scalar_lea.hbm %s1393_s2, 1024  ;;  %p865_p0 = scmp.lt.u32.totalorder %s1176_s11, %s1393_s2 }
  0x59   : > { %p862_p11 = pnand %p860_p13, %p1114_p1  ;;  %p866_p2 = scmp.lt.u32.totalorder %s864_s22, %s859_s1 }
  0x5a   : > { %p868_p5 = scmp.lt.u32.totalorder %s859_s1, %s1176_s11 }
  0x5b   : > { %p863_p7 = pneg %p862_p11  ;;  %p867_p4 = por %p866_p2, %p865_p0 }
  0x5d   : > { %p869_p6 = por %p868_p5, %p867_p4 }
  0x5f   : > { %p870_p9 = pnand %p869_p6, %p863_p7 }
  0x61   : > { %873 = shalt.err (!%p870_p9)
}
  0x62   : > { %s874_s13 = scalar_lea.vmem %s1179_s20, 512  ;;  %s1000_s23 = smov [#allocation7]  }
  0x63   : > { %p875_p12 = scmp.ne.s32.totalorder %s1179_s20, %s874_s13  ;;  %s879_s7 = sshll.u32 %s1000_s23, 4  ;;  %s880_s7 = int_to_ptr.vmem [resolvable:$false] %s879_s7 }
  0x64   : > { %s881_s8 = scalar_lea.vmem %s880_s7, 1024  ;;  %p882_p13 = scmp.lt.s32.totalorder %s1179_s20, %s880_s7 }
  0x65   : > { %p877_p3 = pnand %p875_p12, %p1114_p1  ;;  %p883_p11 = scmp.lt.s32.totalorder %s881_s8, %s874_s13 }
  0x67   : > { %p878_p8 = pneg %p877_p3  ;;  %p884_p0 = por %p883_p11, %p882_p13 }
  0x69   : > { %p885_p2 = pnand %p884_p0, %p878_p8 }
  0x6b   : > { %888 = shalt.err (!%p885_p2)
}
  0x6c   : > { %s1418_s1 = smov 16   ;;  %s1419_s24 = smov 256  }
  0x6d   : > { %s1420_s17 = smov 512   ;;  %s1210_s10 = scalar_lea.hbm %s1394_s3, %s1097_s6 }
  0x6e   : > { %733 = dma.hbm_to_vmem [thread:$0]  (!%p1417_p10), %s1176_s11, 512, %s1179_s20, %s1108_s12, %s1420_s17, %s1419_s24, %s1418_s1  }
  0x6f   : > { %s239_s13 = scalar_lea.vmem [#allocation8], %s1094_s5  ;;  %s236_s7 = scalar_lea.sflag [#allocation9], %s1086_s28 }
  0x70   : > { %s246_s23 = sshll.u32 %s239_s13, 4  ;;  %s889_s8 = scalar_lea.hbm %s1210_s10, 512  ;;  %s1213_s23 = int_to_ptr.vmem [resolvable:$true] %s246_s23 }
  0x71   : > { %p890_p7 = scmp.ne.s32.totalorder %s1210_s10, %s889_s8  ;;  %s894_s20 = scalar_lea.hbm %s1394_s3, 1024 }
  0x72   : > { %p895_p6 = scmp.lt.u32.totalorder %s1210_s10, %s1394_s3  ;;  %p896_p9 = scmp.lt.u32.totalorder %s894_s20, %s889_s8 }
  0x73   : > { %p892_p4 = pnand %p890_p7, %p1114_p1  ;;  %p898_p3 = scmp.lt.u32.totalorder %s889_s8, %s1210_s10 }
  0x74   : > { %p897_p12 = por %p896_p9, %p895_p6 }
  0x75   : > { %p893_p5 = pneg %p892_p4 }
  0x76   : > { %p899_p8 = por %p898_p3, %p897_p12 }
  0x78   : > { %p900_p13 = pnand %p899_p8, %p893_p5 }
  0x7a   : > { %903 = shalt.err (!%p900_p13)
}
  0x7b   : > { %s904_s5 = scalar_lea.vmem %s1213_s23, 512  ;;  %s1001_s9 = smov [#allocation8]  }
  0x7c   : > { %p905_p11 = scmp.ne.s32.totalorder %s1213_s23, %s904_s5  ;;  %s909_s13 = sshll.u32 %s1001_s9, 4  ;;  %s910_s13 = int_to_ptr.vmem [resolvable:$false] %s909_s13 }
  0x7d   : > { %s911_s12 = scalar_lea.vmem %s910_s13, 1024  ;;  %p912_p7 = scmp.lt.s32.totalorder %s1213_s23, %s910_s13 }
  0x7e   : > { %p907_p0 = pnand %p905_p11, %p1114_p1  ;;  %p913_p4 = scmp.lt.s32.totalorder %s911_s12, %s904_s5 }
  0x80   : > { %p908_p2 = pneg %p907_p0  ;;  %p914_p6 = por %p913_p4, %p912_p7 }
  0x82   : > { %p915_p9 = pnand %p914_p6, %p908_p2 }
  0x84   : > { %918 = shalt.err (!%p915_p9)
}
  0x85   : > { %736 = dma.hbm_to_vmem [thread:$0]  (!%p1417_p10), %s1210_s10, 512, %s1213_s23, %s236_s7, %s1420_s17, %s1419_s24, %s1418_s1  }
  0x86   : > { %p1421_p1 = scmp.ne.s32.totalorder %s1416_s30, 0 }
  0x87   : > { %s1245_s14 = sand.u32 (!%p1421_p1), 1, %s985_s16   ;;  %p1422_p5 = scmp.ne.s32.totalorder (!%p1421_p1), %s1410_s25, 0 }
  0x88   : > { %258 = sbr.rel (%p1421_p1) target bundleno = 275 (0x113), region = 36  ;;  %s699_s8 = sshll.u32 (!%p1421_p1), %s1245_s14, 1 }
  0x89   : > { %s261_s11 = scalar_lea.sflag (!%p1421_p1), [#allocation3], %s1245_s14  ;;  %s264_s29 = scalar_lea.vmem (!%p1421_p1), [#allocation2], %s699_s8 }
  0x8f   : > { %964 = dma.done.wait (%p1422_p5), %s261_s11, 32  }
  0x90   : > { %966 = vsyncadd (%p1422_p5), %s261_s11, 4294967264  ;;  %s269_s28 = sand.u32 1, %s1052_s19   ;;  %s1255_s30 = sshll.u32 %s1245_s14, 5 }
  0x91   : > { %s270_s1 = scalar_lea.sflag [#allocation6], %s269_s28  ;;  %s273_s24 = scalar_lea.vmem [#allocation5], %s1255_s30 }
  0x92   : > { %968 = dma.done.wait (%p1422_p5), %s270_s1, 1024  }
  0x93   : > { %970 = vsyncadd (%p1422_p5), %s270_s1, 4294966272  ;;  %s282_s17 = scalar_lea.vmem [#allocation7], %s1255_s30  ;;  %s288_s10 = scalar_lea.sflag [#allocation9], %s1245_s14 }
  0x94   : > { %s291_s23 = scalar_lea.vmem [#allocation8], %s1255_s30 }
  0x95   : > { %972 = dma.done.wait (%p1422_p5), %s288_s10, 512  }
  0x96   : > { %974 = vsyncadd (%p1422_p5), %s288_s10, 4294966784  ;;  %v374_v0 = vlaneseq  ;;  %v1271_v3 = vld [vmem:[%s264_s29] sm:$0x3]  ;;  %v1273_v4 = vld [vmem:[%s273_s24] sm:$0xff]  ;;  %s330_s25 = scalar_lea.vmem [#allocation10], %s1255_s30  ;;  %s713_s20 = sshll.u32 %s1052_s19, 8 }
  0x97   : > { %v341_v5 = vld [vmem:[%s282_s17] sm:$0xff]  ;;  %v343_v6 = vld [vmem:[%s282_s17 + $0x10] sm:$0xff]  ;;  %v1276_v8 = vadd.f32 1.0, %v1271_v3  ;;  %v1282_v13 = vld [vmem:[%s273_s24 + $0x8] sm:$0xff]  ;;  %s544_s7 = sshll.u32 %s330_s25, 4  ;;  %s1347_s5 = scalar_lea.hbm %s1395_s4, %s713_s20  ;;  %s1341_s7 = int_to_ptr.vmem [resolvable:$true] %s544_s7 }
  0x98   : > { %v375_v1 = vshrl.u32 %v374_v0, 7  ;;  %v345_v7 = vld [vmem:[%s291_s23] sm:$0xff]  ;;  %v1280_v10 = vld [vmem:[%s273_s24 + $0x10] sm:$0xff]  ;;  %v342_v15 = vld [vmem:[%s282_s17 + $0x8] sm:$0xff]  ;;  %s531_s19 = scalar_lea.sflag [#allocation4], %s1245_s14  ;;  %s919_s9 = scalar_lea.vmem %s1341_s7, 512 }
  0x99   : > { %v347_v11 = vld [vmem:[%s291_s23 + $0x10] sm:$0xff]  ;;  %v349_v12 = vmul.f32 %v345_v7, %v341_v5  ;;  %v344_v16 = vld [vmem:[%s282_s17 + $0x18] sm:$0xff]  ;;  %v346_v17 = vld [vmem:[%s291_s23 + $0x8] sm:$0xff]  ;;  %781 = vrcp.f32 %v1276_v8  ;;  %p920_p10 = scmp.ne.s32.totalorder %s1341_s7, %s919_s9  ;;  %p1423_p12 = scmp.ne.s32.totalorder %s1411_s26, 0 }
  0x9a   : > { %v1269_v2 = vsub.s32 1, %v375_v1  ;;  %v351_v14 = vmul.f32 %v347_v11, %v343_v6  ;;  %v1286_v19 = vld [vmem:[%s273_s24 + $0x18] sm:$0xff]  ;;  %v350_v21 = vmul.f32 %v346_v17, %v342_v15  ;;  %v1291_v32 = vsub.s32 0, %v375_v1  ;;  %s1002_s13 = smov [#allocation10]  }
  0x9b   : > { %v353_v18 = vmul.f32 %v349_v12, %v1273_v4  ;;  %v348_v20 = vld [vmem:[%s291_s23 + $0x18] sm:$0xff]  ;;  %p921_p3 = pnand %p920_p10, %p1423_p12  ;;  %s923_s12 = sshll.u32 %s1002_s13, 4  ;;  %s924_s12 = int_to_ptr.vmem [resolvable:$false] %s923_s12 }
  0x9c   : > { %v473_v9 = vrot.slane %v1271_v3, %v1269_v2  ;;  %v355_v22 = vmul.f32 %v351_v14, %v1280_v10  ;;  %v352_v23 = vmul.f32 %v348_v20, %v344_v16  ;;  %v354_v24 = vmul.f32 %v350_v21, %v1282_v13  ;;  %s925_s8 = scalar_lea.vmem %s924_s12, 1024  ;;  %p926_p13 = scmp.lt.s32.totalorder %s1341_s7, %s924_s12 }
  0x9d   : > { %v390_v61 = vrot.slane %v1276_v8, %v1291_v32  ;;  %v394_v1 = vrot.slane %v1276_v8, %v1269_v2  ;;  %p922_p8 = pneg %p921_p3  ;;  %p927_p11 = scmp.lt.s32.totalorder %s925_s8, %s919_s9 }
  0x9e   : > { %v357_v25 = vadd.f32 %v355_v22, %v353_v18  ;;  %v356_v26 = vmul.f32 %v352_v23, %v1286_v19 }
  0x9f   : > { %p928_p0 = por %p927_p11, %p926_p13 }
  0xa0   : > { %v358_v27 = vrot.slane %v357_v25, 4  ;;  %v364_v28 = vadd.f32 %v356_v26, %v354_v24 }
  0xa1   : > { %p929_p2 = pnand %p928_p0, %p922_p8 }
  0xa2   : > { %v359_v29 = vadd.f32 %v358_v27, %v357_v25  ;;  %v365_v30 = vrot.slane %v364_v28, 4 }
  0xa3   : > { %v782_v34 = vpop.eup %781 }
  0xa4   : > { %v360_v31 = vrot.slane %v359_v29, 2  ;;  %v366_v33 = vadd.f32 %v365_v30, %v364_v28  ;;  %v377_v38 = vrot.slane %v782_v34, %v1291_v32  ;;  %v381_v42 = vrot.slane %v782_v34, %v1269_v2 }
  0xa6   : > { %v361_v35 = vadd.f32 %v360_v31, %v359_v29  ;;  %v367_v36 = vrot.slane %v366_v33, 2 }
  0xa8   : > { %v362_v37 = vrot.slane %v361_v35, 1  ;;  %v368_v39 = vadd.f32 %v367_v36, %v366_v33 }
  0xaa   : > { %v363_v40 = vadd.f32 %v362_v37, %v361_v35  ;;  %v369_v41 = vrot.slane %v368_v39, 1 }
  0xac   : > { %v384_v43 = vmul.f32 %v377_v38, %v363_v40  ;;  %v370_v44 = vadd.f32 %v369_v41, %v368_v39 }
  0xae   : > { %v402_v45 = vrot.slane %v384_v43, %v1291_v32  ;;  %v385_v46 = vmul.f32 %v381_v42, %v370_v44  ;;  %v397_v6 = vmul.f32 %v390_v61, %v384_v43 }
  0xb0   : > { %v407_v47 = vmul.f32 %v402_v45, %v1273_v4  ;;  %v409_v48 = vmul.f32 %v402_v45, %v1280_v10  ;;  %v406_v49 = vrot.slane %v385_v46, %v1291_v32  ;;  %v433_v17 = vmul.f32 %v397_v6, %v397_v6 }
  0xb1   : > { %v469_v45 = vrot.slane %v1271_v3, %v1291_v32 }
  0xb2   : > { %v1299_v50 = vadd.f32 %v407_v47, %v349_v12  ;;  %v1301_v51 = vadd.f32 %v409_v48, %v351_v14  ;;  %v408_v52 = vmul.f32 %v406_v49, %v1282_v13  ;;  %v410_v53 = vmul.f32 %v406_v49, %v1286_v19 }
  0xb3   : > { %v398_v14 = vmul.f32 %v394_v1, %v385_v46 }
  0xb4   : > { %v415_v54 = vmul.f32 %v1299_v50, %v1299_v50  ;;  %v417_v55 = vmul.f32 %v1301_v51, %v1301_v51  ;;  %v1309_v56 = vadd.f32 %v408_v52, %v350_v21  ;;  %v1311_v57 = vadd.f32 %v410_v53, %v352_v23 }
  0xb5   : > { %v434_v22 = vmul.f32 %v398_v14, %v398_v14 }
  0xb6   : > { %v419_v58 = vadd.f32 %v417_v55, %v415_v54  ;;  %v416_v59 = vmul.f32 %v1309_v56, %v1309_v56  ;;  %v418_v60 = vmul.f32 %v1311_v57, %v1311_v57 }
  0xb8   : > { %v420_v62 = vrot.slane %v419_v58, 4  ;;  %v426_v63 = vadd.f32 %v418_v60, %v416_v59 }
  0xba   : > { %v421_v0 = vadd.f32 %v420_v62, %v419_v58  ;;  %v427_v5 = vrot.slane %v426_v63, 4 }
  0xbc   : > { %v422_v7 = vrot.slane %v421_v0, 2  ;;  %v428_v11 = vadd.f32 %v427_v5, %v426_v63 }
  0xbe   : > { %v423_v12 = vadd.f32 %v422_v7, %v421_v0  ;;  %v429_v15 = vrot.slane %v428_v11, 2 }
  0xc0   : > { %v424_v16 = vrot.slane %v423_v12, 1  ;;  %v430_v18 = vadd.f32 %v429_v15, %v428_v11 }
  0xc2   : > { %v425_v20 = vadd.f32 %v424_v16, %v423_v12  ;;  %v431_v21 = vrot.slane %v430_v18, 1 }
  0xc4   : > { %v435_v23 = vsub.f32 %v425_v20, %v433_v17  ;;  %v432_v24 = vadd.f32 %v431_v21, %v430_v18 }
  0xc6   : > { %v437_v25 = vmax.f32 %v435_v23, 1e-12  ;;  %v436_v26 = vsub.f32 %v432_v24, %v434_v22 }
  0xc8   : > { %783 = vrsqrt.f32 %v437_v25  ;;  %v438_v27 = vmax.f32 %v436_v26, 1e-12 }
  0xca   : > { %785 = vrsqrt.f32 %v438_v27 }
  0xd2   : > { %v784_v8 = vpop.eup %783 }
  0xd3   : > { %v441_v28 = vmul.f32 %v784_v8, %v437_v25 }
  0xd4   : > { %v786_v29 = vpop.eup %785 }
  0xd5   : > { %v443_v30 = vmin.f32 %v441_v28, 80.0  ;;  %v442_v31 = vmul.f32 %v786_v29, %v438_v27 }
  0xd7   : > { %v445_v33 = vmul.f32 1.442695, %v443_v30  ;;  %v449_v34 = vsub.f32 0.0, %v443_v30  ;;  %v444_v35 = vmin.f32 %v442_v31, 80.0 }
  0xd9   : > { %787 = vpow2.f32 %v445_v33  ;;  %v451_v36 = vmul.f32 1.442695, %v449_v34  ;;  %v447_v37 = vmul.f32 1.442695, %v444_v35  ;;  %v450_v38 = vsub.f32 0.0, %v444_v35 }
  0xdb   : > { %789 = vpow2.f32 %v451_v36  ;;  %v453_v39 = vmul.f32 1.442695, %v450_v38 }
  0xdc   : > { %791 = vpow2.f32 %v447_v37 }
  0xdd   : > { %793 = vpow2.f32 %v453_v39 }
  0xe3   : > { %v788_v40 = vpop.eup %787 }
  0xe5   : > { %v790_v41 = vpop.eup %789 }
  0xe6   : > { %v792_v42 = vpop.eup %791  ;;  %v455_v43 = vadd.f32 %v790_v41, %v788_v40  ;;  %v459_v44 = vsub.f32 %v788_v40, %v790_v41 }
  0xe7   : > { %v794_v46 = vpop.eup %793 }
  0xe8   : > { %v457_v47 = vmul.f32 0.5, %v455_v43  ;;  %v461_v48 = vmul.f32 0.5, %v459_v44  ;;  %v456_v49 = vadd.f32 %v794_v46, %v792_v42  ;;  %v460_v52 = vsub.f32 %v792_v42, %v794_v46 }
  0xea   : > { %v463_v53 = vmul.f32 %v784_v8, %v461_v48  ;;  %v476_v54 = vmul.f32 %v469_v45, %v457_v47  ;;  %v458_v55 = vmul.f32 0.5, %v456_v49  ;;  %v462_v58 = vmul.f32 0.5, %v460_v52 }
  0xeb   : > { %v485_v5 = vrot.slane %v457_v47, %v1291_v32 }
  0xec   : > { %v478_v59 = vmul.f32 %v463_v53, %v397_v6  ;;  %v464_v60 = vmul.f32 %v786_v29, %v462_v58  ;;  %v477_v61 = vmul.f32 %v473_v9, %v458_v55  ;;  %v497_v7 = vrot.slane %v463_v53, %v1291_v32 }
  0xed   : > { %v489_v12 = vrot.slane %v458_v55, %v1291_v32  ;;  %v490_v15 = vmul.f32 %v485_v5, %v1273_v4  ;;  %v492_v3 = vmul.f32 %v485_v5, %v1280_v10 }
  0xee   : > { %v480_v62 = vadd.f32 %v478_v59, %v476_v54  ;;  %v479_v63 = vmul.f32 %v464_v60, %v398_v14  ;;  %v501_v6 = vrot.slane %v464_v60, %v1291_v32  ;;  %v502_v2 = vmul.f32 %v497_v7, %v1299_v50 }
  0xef   : > { %v504_v9 = vmul.f32 %v497_v7, %v1301_v51  ;;  %v491_v14 = vmul.f32 %v489_v12, %v1282_v13  ;;  %v493_v17 = vmul.f32 %v489_v12, %v1286_v19 }
  0xf0   : > { %v510_v0 = vadd.f32 1.0, %v480_v62  ;;  %v481_v1 = vadd.f32 %v479_v63, %v477_v61  ;;  %v503_v16 = vmul.f32 %v501_v6, %v1309_v56  ;;  %v505_v18 = vmul.f32 %v501_v6, %v1311_v57 }
  0xf1   : > { %v506_v20 = vadd.f32 %v502_v2, %v490_v15  ;;  %v508_v21 = vadd.f32 %v504_v9, %v492_v3 }
  0xf2   : > { %795 = vrcp.f32 %v510_v0  ;;  %v511_v11 = vadd.f32 1.0, %v481_v1  ;;  %v507_v50 = vadd.f32 %v503_v16, %v491_v14  ;;  %v509_v10 = vadd.f32 %v505_v18, %v493_v17 }
  0xf4   : > { %797 = vrcp.f32 %v511_v11 }
  0xfc   : > { %v796_v22 = vpop.eup %795 }
  0xfd   : > { %v517_v4 = vrot.slane %v796_v22, %v1291_v32 }
  0xfe   : > { %v798_v51 = vpop.eup %797 }
  0xff   : > { %v522_v13 = vmul.f32 %v517_v4, %v506_v20  ;;  %v524_v23 = vmul.f32 %v517_v4, %v508_v21  ;;  %v521_v19 = vrot.slane %v798_v51, %v1291_v32 }
 0x101   : > { %526 = vst [vmem:[%s330_s25] sm:$0xff] %v522_v13  ;;  %528 = vst [vmem:[%s330_s25 + $0x10] sm:$0xff] %v524_v23  ;;  %v523_v56 = vmul.f32 %v521_v19, %v507_v50  ;;  %v525_v57 = vmul.f32 %v521_v19, %v509_v10 }
 0x103   : > { %527 = vst [vmem:[%s330_s25 + $0x8] sm:$0xff] %v523_v56  ;;  %529 = vst [vmem:[%s330_s25 + $0x18] sm:$0xff] %v525_v57 }
 0x104   : > { %932 = shalt.err (!%p929_p2)
}
 0x105   : > { %s933_s11 = scalar_lea.hbm %s1347_s5, 512  ;;  %s937_s30 = scalar_lea.hbm %s1395_s4, 1024 }
 0x106   : > { %p934_p7 = scmp.ne.s32.totalorder %s1347_s5, %s933_s11  ;;  %p938_p9 = scmp.lt.u32.totalorder %s1347_s5, %s1395_s4 }
 0x107   : > { %p939_p1 = scmp.lt.u32.totalorder %s937_s30, %s933_s11  ;;  %p941_p10 = scmp.lt.u32.totalorder %s933_s11, %s1347_s5 }
 0x108   : > { %p935_p4 = pnand %p934_p7, %p1423_p12 }
 0x109   : > { %p940_p5 = por %p939_p1, %p938_p9 }
 0x10a   : > { %p936_p6 = pneg %p935_p4 }
 0x10b   : > { %p942_p3 = por %p941_p10, %p940_p5 }
 0x10d   : > { %p943_p8 = pnand %p942_p3, %p936_p6 }
 0x10f   : > { %946 = shalt.err (!%p943_p8)
}
 0x110   : > { %s1003_s17 = smov 256   ;;  %s1004_s10 = smov 512  }
 0x111   : > { %s1005_s23 = smov 16  }
 0x112   : > { %722 = dma.vmem_to_hbm [thread:$0]  (%p1423_p12), %s1341_s7, 512, %s1347_s5, %s531_s19, %s1003_s17, %s1004_s10, %s1005_s23  }
 0x113 PF: > { %s559_s25 = sand.u32 1, %s981_s15   ;;  %p1424_p13 = scmp.ne.s32.totalorder %s1412_s27, 0 }
 0x114   : > { %p1425_p11 = scmp.ge.s32.totalorder %s993_s18, 2  ;;  %s560_s20 = scalar_lea.sflag [#allocation4], %s559_s25 }
 0x116   : > { %p738_p0 = pnand %p1425_p11, %p1424_p13 }
 0x118   : > { %976 = dma.done.wait (!%p738_p0), %s560_s20, 512  }
 0x119   : > { %978 = vsyncadd (!%p738_p0), %s560_s20, 4294966784  ;;  %s1426_s6 = sld [smem:[#allocation15_spill]]  ;;  %s1427_s17 = sld [smem:[#allocation16_spill]] }
 0x11a   : > { %p23_p2 = scmp.ge.s32.totalorder %s1056_s21, 4   ;;  %s1428_s15 = smov %s985_s16 }
 0x11b   : > { %s1430_s18 = smov %s1056_s21 }
 0x11c   :  { %25 = sbr.rel (!%p23_p2) target bundleno = 11 (0xb), region = 118 }
 0x11f   : > { %s1429_s16 = smov %s1426_s6 }
 0x123   :  { %565 = vsyncpa [#allocation3], 1 }
 0x124   :  { %567 = vsyncpa [#allocation3 + $0x1], 1 }
 0x125   :  { %568 = vsyncpa [#allocation6], 1 }
 0x126   :  { %570 = vsyncpa [#allocation6 + $0x1], 1 }
 0x127   :  { %571 = vsyncpa [#allocation9], 1 }
 0x128   :  { %573 = vsyncpa [#allocation9 + $0x1], 1 }
 0x129   :  { %574 = vsyncpa [#allocation4], 1 }
 0x12a   :  { %576 = vsyncpa [#allocation4 + $0x1], 1 }

</bundles_post_ra>
